<compile_context>
chip_gen: v5e
topology: v5e:2x2
jax: 0.10.0
libtpu: 0.0.40
codegen_flags: <defaults>
</compile_context>

<pallas_src>
import math

import jax
import jax.numpy as jnp
from jax.experimental import pallas as pl
from jax.experimental.pallas import tpu as pltpu

ARM = 20.0
FRAME_TIME = 0.2
GRAVITY_ACCEL = 9.81
MASS = 25000.0
MOMENT = 3300000.0
HALF_PI = math.pi / 2.0

# Reference-only constant (NOT a kernel input anymore).
STEP_MATRIX = jnp.array(
    [[1.0, 0.0, 0.0, FRAME_TIME, 0.0, 0.0],
     [0.0, 1.0, 0.0, 0.0, FRAME_TIME, 0.0],
     [0.0, 0.0, 1.0, 0.0, 0.0, FRAME_TIME],
     [0.0, 0.0, 0.0, 1.0, 0.0, 0.0],
     [0.0, 0.0, 0.0, 0.0, 1.0, 0.0],
     [0.0, 0.0, 0.0, 0.0, 0.0, 1.0]],
    dtype=jnp.float32,
)


# -----------------------------------------------------------------------------
# Single-state kernel (module forward semantics): one SMEM scalar input,
# one lane-dense (1, 6) VMEM output, one EUP sin call, pure VPU otherwise.
# -----------------------------------------------------------------------------
def dynamics_kernel(s_ref, out_ref):
    # s_ref: SMEM (8,) float32 = [F, phi, x, y, theta, x_dot, y_dot, theta_dot]
    F = s_ref[0]
    phi = s_ref[1]
    x = s_ref[2]
    y = s_ref[3]
    th = s_ref[4]
    xd = s_ref[5]
    yd = s_ref[6]
    thd = s_ref[7]

    idx = jax.lax.broadcasted_iota(jnp.int32, (1, 6), 1)
    is_x = (idx == 0) | (idx == 3)      # x-component lanes
    is_y = (idx == 1) | (idx == 4)      # y-component lanes
    is_pos = idx < 3                     # position lanes

    # One sin call covers sin(theta-phi), cos(theta-phi) [= sin(.+pi/2)], sin(phi).
    ang = jnp.where(is_x, th - phi,
                    jnp.where(is_y, th - phi + HALF_PI, phi))
    sv = jnp.sin(ang)

    # Per-component velocity increment, replicated onto both its position lane
    # and its velocity lane:  d_x, d_y, d_theta.
    coef = jnp.where(is_x, -F * (FRAME_TIME / MASS),
                     jnp.where(is_y, F * (FRAME_TIME / MASS),
                               F * (ARM * FRAME_TIME / MOMENT)))
    off = jnp.where(is_y, jnp.float32(-GRAVITY_ACCEL * FRAME_TIME),
                    jnp.float32(0.0))
    dvel = coef * sv + off

    # Old state laid out on lanes, and old velocity per component.
    base = (jnp.where(idx == 0, x, 0.0) + jnp.where(idx == 1, y, 0.0)
            + jnp.where(idx == 2, th, 0.0) + jnp.where(idx == 3, xd, 0.0)
            + jnp.where(idx == 4, yd, 0.0) + jnp.where(idx == 5, thd, 0.0))
    vel_old = jnp.where(is_x, xd, jnp.where(is_y, yd, thd))

    # out[pos lane]  = base + FT*(vel_old + dvel)
    # out[vel lane]  = base + dvel
    ft_w = jnp.where(is_pos, jnp.float32(FRAME_TIME), jnp.float32(0.0))
    scale = jnp.where(is_pos, jnp.float32(FRAME_TIME), jnp.float32(1.0))
    out_ref[...] = base + ft_w * vel_old + scale * dvel


def dynamics(state, action):
    """state: (6,) float32, action: (2,) float32 -> (6,) float32"""
    scalars = jnp.concatenate(
        [action.astype(jnp.float32), state.astype(jnp.float32)])  # (8,)
    out = pl.pallas_call(
        dynamics_kernel,
        out_shape=jax.ShapeDtypeStruct((1, 6), jnp.float32),
        in_specs=[pl.BlockSpec(memory_space=pltpu.MemorySpace.SMEM)],
        out_specs=pl.BlockSpec(memory_space=pltpu.MemorySpace.VMEM),
    )(scalars)
    return out.reshape(6)


# -----------------------------------------------------------------------------
# Batched kernel: B independent (state, action) pairs in ONE pallas_call.
# Layout: batch on the lane axis, state components on sublanes
# (pos: (3, B), vel: (3, B), actions: (2, B)).  Full-width VPU/EUP work,
# lane-dense stores, still no MXU.
# -----------------------------------------------------------------------------
def dynamics_batched_kernel(act_ref, pos_ref, vel_ref, out_pos_ref, out_vel_ref):
    B = pos_ref.shape[1]
    F = act_ref[0:1, :]          # (1, B)
    phi = act_ref[1:2, :]        # (1, B)
    theta = pos_ref[2:3, :]      # (1, B)

    sidx = jax.lax.broadcasted_iota(jnp.int32, (3, B), 0)
    # Rows: [theta-phi, theta-phi+pi/2, phi] -> one sin gives [sin, cos, sin].
    ang = jnp.where(sidx == 0, theta - phi,
                    jnp.where(sidx == 1, theta - phi + HALF_PI, phi))
    sv = jnp.sin(ang)

    coef = jnp.where(sidx == 0, F * (-FRAME_TIME / MASS),
                     jnp.where(sidx == 1, F * (FRAME_TIME / MASS),
                               F * (ARM * FRAME_TIME / MOMENT)))
    off = jnp.where(sidx == 1, jnp.float32(-GRAVITY_ACCEL * FRAME_TIME),
                    jnp.float32(0.0))

    new_vel = vel_ref[...] + coef * sv + off
    out_vel_ref[...] = new_vel
    out_pos_ref[...] = pos_ref[...] + jnp.float32(FRAME_TIME) * new_vel


def dynamics_batched(states, actions):
    """states: (B, 6) float32, actions: (B, 2) float32 -> (B, 6) float32"""
    B = states.shape[0]
    st_t = states.astype(jnp.float32).T      # (6, B) component-major
    act_t = actions.astype(jnp.float32).T    # (2, B)
    pos_t = st_t[0:3]                        # (3, B)
    vel_t = st_t[3:6]                        # (3, B)
    new_pos, new_vel = pl.pallas_call(
        dynamics_batched_kernel,
        out_shape=(jax.ShapeDtypeStruct((3, B), jnp.float32),
                   jax.ShapeDtypeStruct((3, B), jnp.float32)),
        in_specs=[pl.BlockSpec(memory_space=pltpu.MemorySpace.VMEM)] * 3,
        out_specs=(pl.BlockSpec(memory_space=pltpu.MemorySpace.VMEM),
                   pl.BlockSpec(memory_space=pltpu.MemorySpace.VMEM)),
    )(act_t, pos_t, vel_t)
    return jnp.concatenate([new_pos, new_vel], axis=0).T  # (B, 6)


# -----------------------------------------------------------------------------
# Pure-JAX reference mirroring the PyTorch forward.
# -----------------------------------------------------------------------------
def dynamics_ref(state, action):
    F, phi = action[0], action[1]
    theta = state[2]
    d_xDot = -F * jnp.sin(theta - phi) / MASS * FRAME_TIME
    d_yDot = (F * jnp.cos(theta - phi) / MASS - GRAVITY_ACCEL) * FRAME_TIME
    d_thetaDot = F * jnp.sin(phi) * ARM / MOMENT * FRAME_TIME
    xDotMask = jnp.array([0, 0, 0, 1, 0, 0], jnp.float32)
    yDotMask = jnp.array([0, 0, 0, 0, 1, 0], jnp.float32)
    thetaDotMask = jnp.array([0, 0, 0, 0, 0, 1], jnp.float32)
    s = state + xDotMask * d_xDot + yDotMask * d_yDot + thetaDotMask * d_thetaDot
    return STEP_MATRIX @ s


if __name__ == "__main__":
    key = jax.random.PRNGKey(0)
    k1, k2, k3, k4 = jax.random.split(key, 4)

    # --- single state/action (module forward semantics) ---
    # state: [x, y, theta, x_dot, y_dot, theta_dot]
    state = jax.random.normal(k1, (6,), dtype=jnp.float32)
    # action: [thrust, phi]
    action = jnp.array(
        [jnp.abs(jax.random.normal(k2, (), dtype=jnp.float32)) * 1.0e5 + 1.0e4,
         0.1],
        dtype=jnp.float32,
    )
    out = dynamics(state, action)
    jax.block_until_ready(out)
    ref = dynamics_ref(state, action)
    assert jnp.allclose(out, ref, rtol=1e-5, atol=1e-4), (out, ref)

    # --- batched: 128 independent states in one pallas_call (lane-major) ---
    B = 128
    states = jax.random.normal(k3, (B, 6), dtype=jnp.float32)
    thrust = jnp.abs(jax.random.normal(k4, (B,), dtype=jnp.float32)) * 1.0e5 + 1.0e4
    phis = jax.random.uniform(k4, (B,), dtype=jnp.float32, minval=-0.3, maxval=0.3)
    actions = jnp.stack([thrust, phis], axis=1)
    out_b = dynamics_batched(states, actions)
    jax.block_until_ready(out_b)
    ref_b = jax.vmap(dynamics_ref)(states, actions)
    assert jnp.allclose(out_b, ref_b, rtol=1e-5, atol=1e-4), (out_b, ref_b)

    print("KERNEL_OK")
</pallas_src>

<mosaic_0001>
module attributes {stable_mosaic.version = 11 : i64} {
  func.func @dynamics_kernel(%arg0: memref<8xf32, #tpu.memory_space<smem>>, %arg1: memref<1x6xf32, #tpu.memory_space<vmem>>) attributes {dimension_semantics = [], scalar_prefetch = 0 : i64, scratch_operands = 0 : i64, tpu.core_type = #tpu.core_type<tc>} {
    %c0 = arith.constant 0 : index
    %0 = memref.load %arg0[%c0] : memref<8xf32, #tpu.memory_space<smem>>
    %c1 = arith.constant 1 : index
    %1 = memref.load %arg0[%c1] : memref<8xf32, #tpu.memory_space<smem>>
    %c2 = arith.constant 2 : index
    %2 = memref.load %arg0[%c2] : memref<8xf32, #tpu.memory_space<smem>>
    %c3 = arith.constant 3 : index
    %3 = memref.load %arg0[%c3] : memref<8xf32, #tpu.memory_space<smem>>
    %c4 = arith.constant 4 : index
    %4 = memref.load %arg0[%c4] : memref<8xf32, #tpu.memory_space<smem>>
    %c5 = arith.constant 5 : index
    %5 = memref.load %arg0[%c5] : memref<8xf32, #tpu.memory_space<smem>>
    %c6 = arith.constant 6 : index
    %6 = memref.load %arg0[%c6] : memref<8xf32, #tpu.memory_space<smem>>
    %c7 = arith.constant 7 : index
    %7 = memref.load %arg0[%c7] : memref<8xf32, #tpu.memory_space<smem>>
    %8 = tpu.iota {dimensions = array<i32: 1>} : vector<1x6xi32>
    %c0_i32 = arith.constant 0 : i32
    %9 = vector.broadcast %c0_i32 : i32 to vector<1x6xi32>
    %10 = arith.cmpi eq, %8, %9 : vector<1x6xi32>
    %c3_i32 = arith.constant 3 : i32
    %11 = vector.broadcast %c3_i32 : i32 to vector<1x6xi32>
    %12 = arith.cmpi eq, %8, %11 : vector<1x6xi32>
    %13 = arith.ori %10, %12 : vector<1x6xi1>
    %c1_i32 = arith.constant 1 : i32
    %14 = vector.broadcast %c1_i32 : i32 to vector<1x6xi32>
    %15 = arith.cmpi eq, %8, %14 : vector<1x6xi32>
    %c4_i32 = arith.constant 4 : i32
    %16 = vector.broadcast %c4_i32 : i32 to vector<1x6xi32>
    %17 = arith.cmpi eq, %8, %16 : vector<1x6xi32>
    %18 = arith.ori %15, %17 : vector<1x6xi1>
    %c3_i32_0 = arith.constant 3 : i32
    %19 = vector.broadcast %c3_i32_0 : i32 to vector<1x6xi32>
    %20 = arith.cmpi slt, %8, %19 : vector<1x6xi32>
    %21 = arith.subf %4, %1 : f32
    %22 = arith.subf %4, %1 : f32
    %cst = arith.constant 1.57079637 : f32
    %23 = arith.addf %22, %cst : f32
    %24 = vector.broadcast %23 : f32 to vector<1x6xf32>
    %25 = vector.broadcast %1 : f32 to vector<1x6xf32>
    %26 = arith.select %18, %24, %25 : vector<1x6xi1>, vector<1x6xf32>
    %27 = vector.broadcast %21 : f32 to vector<1x6xf32>
    %28 = arith.select %13, %27, %26 : vector<1x6xi1>, vector<1x6xf32>
    %29 = math.sin %28 : vector<1x6xf32>
    %cst_1 = arith.constant 0.000000e+00 : f32
    %30 = arith.subf %cst_1, %0 : f32
    %cst_2 = arith.constant 8.000000e-06 : f32
    %31 = arith.mulf %30, %cst_2 : f32
    %cst_3 = arith.constant 8.000000e-06 : f32
    %32 = arith.mulf %0, %cst_3 : f32
    %cst_4 = arith.constant 1.21212122E-6 : f32
    %33 = arith.mulf %0, %cst_4 : f32
    %34 = vector.broadcast %32 : f32 to vector<1x6xf32>
    %35 = vector.broadcast %33 : f32 to vector<1x6xf32>
    %36 = arith.select %18, %34, %35 : vector<1x6xi1>, vector<1x6xf32>
    %37 = vector.broadcast %31 : f32 to vector<1x6xf32>
    %38 = arith.select %13, %37, %36 : vector<1x6xi1>, vector<1x6xf32>
    %cst_5 = arith.constant -1.962000e+00 : f32
    %cst_6 = arith.constant 0.000000e+00 : f32
    %39 = vector.broadcast %cst_5 : f32 to vector<1x6xf32>
    %40 = vector.broadcast %cst_6 : f32 to vector<1x6xf32>
    %41 = arith.select %18, %39, %40 : vector<1x6xi1>, vector<1x6xf32>
    %42 = arith.mulf %38, %29 : vector<1x6xf32>
    %43 = arith.addf %42, %41 : vector<1x6xf32>
    %c0_i32_7 = arith.constant 0 : i32
    %44 = vector.broadcast %c0_i32_7 : i32 to vector<1x6xi32>
    %45 = arith.cmpi eq, %8, %44 : vector<1x6xi32>
    %cst_8 = arith.constant 0.000000e+00 : f32
    %46 = vector.broadcast %2 : f32 to vector<1x6xf32>
    %47 = vector.broadcast %cst_8 : f32 to vector<1x6xf32>
    %48 = arith.select %45, %46, %47 : vector<1x6xi1>, vector<1x6xf32>
    %c1_i32_9 = arith.constant 1 : i32
    %49 = vector.broadcast %c1_i32_9 : i32 to vector<1x6xi32>
    %50 = arith.cmpi eq, %8, %49 : vector<1x6xi32>
    %cst_10 = arith.constant 0.000000e+00 : f32
    %51 = vector.broadcast %3 : f32 to vector<1x6xf32>
    %52 = vector.broadcast %cst_10 : f32 to vector<1x6xf32>
    %53 = arith.select %50, %51, %52 : vector<1x6xi1>, vector<1x6xf32>
    %54 = arith.addf %48, %53 : vector<1x6xf32>
    %c2_i32 = arith.constant 2 : i32
    %55 = vector.broadcast %c2_i32 : i32 to vector<1x6xi32>
    %56 = arith.cmpi eq, %8, %55 : vector<1x6xi32>
    %cst_11 = arith.constant 0.000000e+00 : f32
    %57 = vector.broadcast %4 : f32 to vector<1x6xf32>
    %58 = vector.broadcast %cst_11 : f32 to vector<1x6xf32>
    %59 = arith.select %56, %57, %58 : vector<1x6xi1>, vector<1x6xf32>
    %60 = arith.addf %54, %59 : vector<1x6xf32>
    %c3_i32_12 = arith.constant 3 : i32
    %61 = vector.broadcast %c3_i32_12 : i32 to vector<1x6xi32>
    %62 = arith.cmpi eq, %8, %61 : vector<1x6xi32>
    %cst_13 = arith.constant 0.000000e+00 : f32
    %63 = vector.broadcast %5 : f32 to vector<1x6xf32>
    %64 = vector.broadcast %cst_13 : f32 to vector<1x6xf32>
    %65 = arith.select %62, %63, %64 : vector<1x6xi1>, vector<1x6xf32>
    %66 = arith.addf %60, %65 : vector<1x6xf32>
    %c4_i32_14 = arith.constant 4 : i32
    %67 = vector.broadcast %c4_i32_14 : i32 to vector<1x6xi32>
    %68 = arith.cmpi eq, %8, %67 : vector<1x6xi32>
    %cst_15 = arith.constant 0.000000e+00 : f32
    %69 = vector.broadcast %6 : f32 to vector<1x6xf32>
    %70 = vector.broadcast %cst_15 : f32 to vector<1x6xf32>
    %71 = arith.select %68, %69, %70 : vector<1x6xi1>, vector<1x6xf32>
    %72 = arith.addf %66, %71 : vector<1x6xf32>
    %c5_i32 = arith.constant 5 : i32
    %73 = vector.broadcast %c5_i32 : i32 to vector<1x6xi32>
    %74 = arith.cmpi eq, %8, %73 : vector<1x6xi32>
    %cst_16 = arith.constant 0.000000e+00 : f32
    %75 = vector.broadcast %7 : f32 to vector<1x6xf32>
    %76 = vector.broadcast %cst_16 : f32 to vector<1x6xf32>
    %77 = arith.select %74, %75, %76 : vector<1x6xi1>, vector<1x6xf32>
    %78 = arith.addf %72, %77 : vector<1x6xf32>
    %79 = vector.broadcast %6 : f32 to vector<1x6xf32>
    %80 = vector.broadcast %7 : f32 to vector<1x6xf32>
    %81 = arith.select %18, %79, %80 : vector<1x6xi1>, vector<1x6xf32>
    %82 = vector.broadcast %5 : f32 to vector<1x6xf32>
    %83 = arith.select %13, %82, %81 : vector<1x6xi1>, vector<1x6xf32>
    %cst_17 = arith.constant 2.000000e-01 : f32
    %cst_18 = arith.constant 0.000000e+00 : f32
    %84 = vector.broadcast %cst_17 : f32 to vector<1x6xf32>
    %85 = vector.broadcast %cst_18 : f32 to vector<1x6xf32>
    %86 = arith.select %20, %84, %85 : vector<1x6xi1>, vector<1x6xf32>
    %cst_19 = arith.constant 2.000000e-01 : f32
    %cst_20 = arith.constant 1.000000e+00 : f32
    %87 = vector.broadcast %cst_19 : f32 to vector<1x6xf32>
    %88 = vector.broadcast %cst_20 : f32 to vector<1x6xf32>
    %89 = arith.select %20, %87, %88 : vector<1x6xi1>, vector<1x6xf32>
    %90 = arith.mulf %86, %83 : vector<1x6xf32>
    %91 = arith.addf %78, %90 : vector<1x6xf32>
    %92 = arith.mulf %89, %43 : vector<1x6xf32>
    %93 = arith.addf %91, %92 : vector<1x6xf32>
    %c0_21 = arith.constant 0 : index
    %c0_22 = arith.constant 0 : index
    %94 = vector.load %arg1[%c0_21, %c0_22] : memref<1x6xf32, #tpu.memory_space<vmem>>, vector<1x6xf32>
    tpu.vector_store %arg1[%c0_21, %c0_22], %93 {strides = array<i32>} : memref<1x6xf32, #tpu.memory_space<vmem>>, vector<1x6xf32>,
    return
  }
}

</mosaic_0001>

<bundles_post_ra>
// kernel: tpu_custom_call.1
= control target key start
LH: loop header
LB: loop body
LE: loop exit
PB: predicated region body
PF: predicated region fallthrough
CT: control target
= control target key end

     0   :  { %6 = vsyncpa [#allocation4], 0  ;;  %s470_s0 = inlined_call_operand.hbm [shape: f32[8], index: 0, kind: input, shape index: {}]   ;;  %s471_s1 = inlined_call_operand.hbm [shape: f32[1,6], index: 1, kind: output, shape index: {}]  }
   0x1   :  { %7 = vsyncpa [#allocation3], 0  ;;  %s13_s8 = sshll.u32 %s470_s0, 4  ;;  %s320_s9 = smov [#allocation2]   ;;  %s14_s8 = int_to_ptr.hbm [resolvable:$true] %s13_s8 }
   0x2   :  { %16 = dma.hbm_to_smem %s14_s8, 16, %s320_s9, [#allocation4]  }
   0x3   :  { %316 = dma.done.wait [#allocation4], 16  }
   0x4   :  { %317 = vsyncadd [#allocation4], 4294967280 }
   0x5   :  { %21 = sfence }
   0x6   :  { %v30_v0 = vlaneseq  ;;  %s259_s10 = sld [smem:[#allocation2 + $0x1]]  ;;  %v321_v20 = vmov 683565275   ;;  %v322_v22 = vmov 2475754826   ;;  %s330_s23 = smov [#allocation5]  }
   0x7   :  { %s344_s11 = sld [smem:[#allocation2 + $0x4]]  ;;  %v323_v24 = vmov 2131351028   ;;  %v324_v26 = vmov 2102212464   ;;  %s247_s24 = sshll.u32 %s330_s23, 4  ;;  %s248_s24 = int_to_ptr.vmem [resolvable:$true] %s247_s24 }
   0x8   :  { %v346_v1 = vand.u32 127, %v30_v0  ;;  %v325_v28 = vmov 920167782   ;;  %v326_v34 = vmov 1326507024   ;;  %s260_s13 = sld [smem:[#allocation2 + $0x2]] }
   0x9   :  { %s261_s14 = sld [smem:[#allocation2 + $0x3]]  ;;  %s249_s27 = sshll.u32 %s471_s1, 4  ;;  %s250_s27 = int_to_ptr.hbm [resolvable:$true] %s249_s27 }
   0xa   :  { %vm35_vm0 = vcmp.eq.s32.totalorder %v346_v1, 1  ;;  %vm36_vm1 = vcmp.eq.s32.totalorder %v346_v1, 4  ;;  %vm32_vm2 = vcmp.eq.s32.totalorder %v346_v1, 0  ;;  %vm33_vm3 = vcmp.eq.s32.totalorder %v346_v1, 3  ;;  %s421_s15 = sld [smem:[#allocation2 + $0x5]] }
   0xb   :  { %vm357_vm4 = vmor %vm35_vm0, %vm36_vm1  ;;  %s423_s16 = sld [smem:[#allocation2]] }
   0xc   :  { %v42_v3 = vstv %s259_s10  ;;  %vm365_vm5 = vmor %vm32_vm2, %vm33_vm3  ;;  %s428_s17 = sld [smem:[#allocation2 + $0x6]] }
   0xd   :  { %s39_s0 = ssub.f32 %s344_s11, %s259_s10 }
   0xe   :  { %s434_s18 = sld [smem:[#allocation2 + $0x7]] }
   0xf   :  { %s40_s12 = sadd.f32 1.5707964, %s39_s0  ;;  %v44_v5 = vstv %s39_s0 }
  0x11   :  { %v41_v6 = vstv %s40_s12  ;;  %s203_s19 = smul.f32 8e-06, %s423_s16  ;;  %s201_s20 = ssub.f32 0.0, %s423_s16 }
  0x12   :  { %v43_v7 = vsel %vm357_vm4, %v41_v6, %v42_v3  ;;  %s204_s21 = smul.f32 1.2121212e-06, %s423_s16 }
  0x13   :  { %v373_v8 = vsel %vm365_vm5, %v44_v5, %v43_v7  ;;  %s202_s22 = smul.f32 8e-06, %s201_s20 }
  0x14   :  { %v49_v9 = vand.u32 2139095040, %v373_v8  ;;  %v46_v11 = vand.u32 2147483647, %v373_v8 }
  0x16   :  { %v50_v10 = vshrl.u32 %v49_v9, 23  ;;  %v53_v14 = vand.u32 8388607, %v46_v11 }
  0x18   :  { %v266_v12 = vadd.s32 4294967169, %v50_v10  ;;  %v54_v17 = vor.u32 8388608, %v53_v14 }
  0x1a   :  { %v56_v13 = vadd.s32 1, %v266_v12  ;;  %v382_v36 = vshll.u32 %v54_v17, 8 }
  0x1c   :  { %vm57_vm6 = vcmp.gt.s32.totalorder %v56_v13, 0  ;;  %v95_v48 = vand.u32 65535, %v382_v36  ;;  %v96_v49 = vshrl.u32 %v382_v36, 16 }
  0x1d   :  { %v58_v15 = vsel %vm57_vm6, %v56_v13, 0  ;;  %v327_v13 = vmov 0  }
  0x1e   :  { %v60_v16 = vand.u32 31, %v58_v15  ;;  %v379_v18 = vshrl.u32 %v58_v15, 5 }
  0x20   :  { %v61_v19 = vsub.s32 32, %v60_v16  ;;  %v63_v21 = vshll.u32 %v321_v20, %v60_v16  ;;  %v66_v23 = vshll.u32 %v322_v22, %v60_v16  ;;  %v69_v25 = vshll.u32 %v323_v24, %v60_v16 }
  0x21   :  { %v72_v27 = vshll.u32 %v324_v26, %v60_v16  ;;  %v75_v29 = vshll.u32 %v325_v28, %v60_v16  ;;  %vm78_vm7 = vcmp.lt.s32.totalorder %v379_v18, 1  ;;  %vm81_vm8 = vcmp.lt.s32.totalorder %v379_v18, 4 }
  0x22   :  { %v64_v30 = vshrl.u32 %v322_v22, %v61_v19  ;;  %v67_v31 = vshrl.u32 %v323_v24, %v61_v19  ;;  %v70_v32 = vshrl.u32 %v324_v26, %v61_v19  ;;  %v73_v33 = vshrl.u32 %v325_v28, %v61_v19 }
  0x23   :  { %v76_v35 = vshrl.u32 %v326_v34, %v61_v19  ;;  %vm80_vm9 = vcmp.lt.s32.totalorder %v379_v18, 3  ;;  %vm79_vm10 = vcmp.lt.s32.totalorder %v379_v18, 2  ;;  %v62_v56 = vshrl.u32 %v321_v20, %v61_v19 }
  0x24   :  { %v65_v37 = vor.u32 %v64_v30, %v63_v21  ;;  %v68_v38 = vor.u32 %v67_v31, %v66_v23  ;;  %v71_v39 = vor.u32 %v70_v32, %v69_v25  ;;  %v74_v40 = vor.u32 %v73_v33, %v72_v27 }
  0x25   :  { %v77_v41 = vor.u32 %v76_v35, %v75_v29 }
  0x26   :  { %v86_v42 = vsel %vm78_vm7, %v65_v37, %v68_v38  ;;  %v90_v43 = vsel %vm78_vm7, %v68_v38, %v71_v39  ;;  %v87_v44 = vsel %vm81_vm8, %v74_v40, 920167782  ;;  %v82_v9 = vsel %vm78_vm7, %v62_v56, %v65_v37 }
  0x27   :  { %v91_v45 = vsel %vm81_vm8, %v77_v41, 1326507024  ;;  %v88_v46 = vsel %vm80_vm9, %v71_v39, %v87_v44  ;;  %v83_v12 = vsel %vm81_vm8, %v71_v39, 2102212464  ;;  %vm48_vm8 = vcmp.lt.s32.totalorder %v373_v8, 0 }
  0x28   :  { %v92_v47 = vsel %vm80_vm9, %v74_v40, %v91_v45  ;;  %v89_v50 = vsel %vm79_vm10, %v86_v42, %v88_v46  ;;  %v84_v23 = vsel %vm80_vm9, %v68_v38, %v83_v12  ;;  %vm417_vm9 = vcmp.le.f32.partialorder %v46_v11, 0.7853982 }
  0x29   :  { %v93_v51 = vsel %vm79_vm10, %v90_v43, %v92_v47  ;;  %v119_v54 = vand.u32 65535, %v89_v50  ;;  %v120_v55 = vshrl.u32 %v89_v50, 16  ;;  %v85_v31 = vsel %vm79_vm10, %v82_v9, %v84_v23 }
  0x2a   :  { %v97_v52 = vand.u32 65535, %v93_v51  ;;  %v98_v53 = vshrl.u32 %v93_v51, 16  ;;  %v139_v35 = vmul.u32 %v382_v36, %v85_v31  ;;  %vm218_vm10 = vcmp.eq.s32.totalorder %v346_v1, 2 }
  0x2b   :  { %v121_v60 = vmul.u32 %v119_v54, %v95_v48  ;;  %v122_v61 = vmul.u32 %v120_v55, %v95_v48  ;;  %v123_v62 = vmul.u32 %v119_v54, %v96_v49  ;;  %v124_v5 = vmul.u32 %v120_v55, %v96_v49 }
  0x2c   :  { %v99_v57 = vmul.u32 %v97_v52, %v95_v48  ;;  %v100_v58 = vmul.u32 %v98_v53, %v95_v48  ;;  %v101_v59 = vmul.u32 %v97_v52, %v96_v49  ;;  %v102_v63 = vmul.u32 %v98_v53, %v96_v49 }
  0x2d   :  { %v125_v6 = vshll.u32 %v122_v61, 16  ;;  %v127_v7 = vshll.u32 %v123_v62, 16  ;;  %v126_v21 = vshrl.u32 %v122_v61, 16  ;;  %v128_v27 = vshrl.u32 %v123_v62, 16 }
  0x2e   :  { %v103_v0 = vshll.u32 %v100_v58, 16  ;;  %v105_v3 = vshll.u32 %v101_v59, 16  ;;  %v104_v16 = vshrl.u32 %v100_v58, 16  ;;  %v106_v24 = vshrl.u32 %v101_v59, 16 }
  0x2f   :  { %vm129_vm12 = vc.u32 %v121_v60, %v125_v6  ;;  %v131_v15 = vadd.s32 %v125_v6, %v121_v60  ;;  %v213_v62 = vstv %s260_s13  ;;  %v219_v9 = vstv %s344_s11 }
  0x30   :  { %vm107_vm11 = vc.u32 %v99_v57, %v103_v0  ;;  %v109_v10 = vadd.s32 %v103_v0, %v99_v57  ;;  %v130_v19 = vsel %vm129_vm12, 1, %v327_v13  ;;  %v214_v6 = vsel %vm32_vm2, %v213_v62, 0.0 }
  0x31   :  { %v108_v14 = vsel %vm107_vm11, 1, %v327_v13  ;;  %v132_v22 = vadd.s32 %v130_v19, %v124_v5  ;;  %vm133_vm14 = vc.u32 %v131_v15, %v127_v7  ;;  %v135_v30 = vadd.s32 %v131_v15, %v127_v7 }
  0x32   :  { %v110_v17 = vadd.s32 %v108_v14, %v102_v63  ;;  %vm111_vm13 = vc.u32 %v109_v10, %v105_v3  ;;  %v134_v26 = vsel %vm133_vm14, 1, %v327_v13  ;;  %v215_v63 = vstv %s261_s14 }
  0x33   :  { %v112_v20 = vsel %vm111_vm13, 1, %v327_v13  ;;  %v136_v28 = vadd.s32 %v134_v26, %v132_v22  ;;  %v216_v7 = vsel %vm35_vm0, %v215_v63, 0.0  ;;  %v229_v31 = vstv %s434_s18 }
  0x34   :  { %v114_v25 = vadd.s32 %v112_v20, %v110_v17  ;;  %v217_v14 = vadd.f32 %v216_v7, %v214_v6  ;;  %v220_v17 = vsel %vm218_vm10, %v219_v9, 0.0  ;;  %v222_v20 = vstv %s421_s15 }
  0x35   :  { %v137_v32 = vadd.s32 %v136_v28, %v126_v21  ;;  %v223_v26 = vsel %vm33_vm3, %v222_v20, 0.0  ;;  %v225_v28 = vstv %s428_s17  ;;  %vm38_vm0 = vcmp.lt.s32.totalorder %v346_v1, 3 }
  0x36   :  { %v115_v29 = vadd.s32 %v114_v25, %v104_v16  ;;  %v221_v23 = vadd.f32 %v220_v17, %v217_v14  ;;  %vm228_vm11 = vcmp.eq.s32.totalorder %v346_v1, 5 }
  0x37   :  { %v138_v34 = vadd.s32 %v137_v32, %v128_v27  ;;  %v205_v32 = vstv %s203_s19 }
  0x38   :  { %v116_v33 = vadd.s32 %v115_v29, %v106_v24 }
  0x39   :  { %v142_v37 = vadd.s32 1, %v138_v34 }
  0x3a   :  { %vm141_vm15 = vc.u32 %v116_v33, %v135_v30  ;;  %v140_v18 = vadd.s32 %v135_v30, %v116_v33  ;;  %v206_v33 = vstv %s204_s21 }
  0x3b   :  { %v143_v39 = vsel %vm141_vm15, %v142_v37, %v138_v34  ;;  %v224_v34 = vadd.f32 %v223_v26, %v221_v23 }
  0x3c   :  { %v144_v40 = vadd.s32 %v143_v39, %v139_v35  ;;  %v226_v39 = vsel %vm36_vm1, %v225_v28, 0.0  ;;  %vm189_vm1 = vweird.f32 %v373_v8 }
  0x3e   :  { %v145_v38 = vadd.s32 536870912, %v144_v40 }
  0x40   :  { %v146_v41 = vshrl.u32 %v145_v38, 30 }
  0x42   :  { %v147_v42 = vshll.u32 %v146_v41, 30  ;;  %v170_v59 = vsub.s32 4, %v146_v41 }
  0x44   :  { %v148_v43 = vsub.s32 %v144_v40, %v147_v42  ;;  %v171_v3 = vsel %vm48_vm8, %v170_v59, %v146_v41  ;;  %v232_v40 = vsel %vm357_vm4, %v225_v28, %v229_v31  ;;  %v207_v42 = vsel %vm357_vm4, %v205_v32, %v206_v33 }
  0x45   :  { %v173_v10 = vsel %vm417_vm9, 0, %v171_v3 }
  0x46   :  { %vm149_vm6 = vcmp.lt.s32.totalorder %v148_v43, 0  ;;  %v150_v44 = vsub.s32 0, %v148_v43  ;;  %v190_v19 = vadd.s32 3, %v173_v10 }
  0x48   :  { %v151_v45 = vsel %vm149_vm6, %v150_v44, %v148_v43  ;;  %v191_v27 = vand.u32 3, %v190_v19  ;;  %v227_v44 = vadd.f32 %v226_v39, %v224_v34 }
  0x49   :  { %v152_v46 = vclz %v151_v45  ;;  %v328_v45 = vmov 0.0  }
  0x4a   :  { %vm196_vm2 = vcmp.eq.s32.totalorder %v191_v27, 2  ;;  %vm192_vm3 = vcmp.lt.s32.totalorder %v191_v27, 2  ;;  %vm193_vm12 = vcmp.eq.s32.totalorder %v191_v27, 0 }
  0x4b   :  { %v267_v47 = vadd.s32 4294967294, %v152_v46  ;;  %v234_v46 = vsel %vm38_vm0, 0.2, %v328_v45 }
  0x4d   :  { %vm268_vm7 = vcmp.lt.s32.totalorder %v267_v47, 0 }
  0x4e   :  { %v155_v48 = vsel %vm268_vm7, 0, %v267_v47 }
  0x4f   :  { %v156_v49 = vsub.s32 32, %v155_v48  ;;  %v157_v50 = vshll.u32 %v148_v43, %v155_v48  ;;  %v160_v51 = vsub.s32 4294967266, %v155_v48  ;;  %v208_v43 = vstv %s202_s22 }
  0x50   :  { %v230_v48 = vsel %vm228_vm11, %v229_v31, 0.0 }
  0x51   :  { %v158_v36 = vshrl.u32 %v140_v18, %v156_v49  ;;  %v161_v52 = vadd.s32 127, %v160_v51  ;;  %v233_v49 = vsel %vm365_vm5, %v222_v20, %v232_v40  ;;  %v209_v51 = vsel %vm365_vm5, %v208_v43, %v207_v42 }
  0x52   :  { %vm240_vm5 = vcmask 40960  }
  0x53   :  { %v159_v53 = vor.u32 %v158_v36, %v157_v50  ;;  %v162_v54 = vshll.u32 %v161_v52, 23  ;;  %v231_v52 = vadd.f32 %v230_v48, %v227_v44 }
  0x55   :  { %v163_v55 = vor.u32 4788187, %v162_v54  ;;  %v166_v56 = vcvt.s32.f32 %v159_v53  ;;  %v236_v53 = vmul.f32 %v234_v46, %v233_v49 }
  0x57   :  { %v164_v57 = vand.u32 2147483647, %v163_v55  ;;  %v210_v55 = vsel %vm357_vm4, -1.962, %v328_v45  ;;  %v237_v60 = vadd.f32 %v236_v53, %v231_v52 }
  0x59   :  { %v167_v58 = vmul.f32 %v166_v56, %v164_v57  ;;  %v329_v57 = vmov 1.0  }
  0x5b   :  { %v168_v61 = vxor.u32 2147483648, %v167_v58 }
  0x5d   :  { %v169_v0 = vsel %vm48_vm8, %v168_v61, %v167_v58  ;;  %v235_v58 = vsel %vm38_vm0, 0.2, %v329_v57 }
  0x5e   :  { %v172_v5 = vsel %vm417_vm9, %v373_v8, %v169_v0 }
  0x5f   :  { %v174_v11 = vmul.f32 %v172_v5, %v172_v5 }
  0x61   :  { %v175_v12 = vmul.f32 -0.001358992, %v174_v11  ;;  %v182_v13 = vmul.f32 -0.00019511016, %v174_v11 }
  0x63   :  { %v176_v15 = vadd.f32 0.041655596, %v175_v12  ;;  %v183_v16 = vadd.f32 0.008332121, %v182_v13 }
  0x65   :  { %v177_v21 = vmul.f32 %v176_v15, %v174_v11  ;;  %v184_v22 = vmul.f32 %v183_v16, %v174_v11 }
  0x67   :  { %v178_v24 = vadd.f32 -0.4999988, %v177_v21  ;;  %v185_v25 = vadd.f32 -0.16666654, %v184_v22 }
  0x69   :  { %v179_v29 = vmul.f32 %v178_v24, %v174_v11  ;;  %v186_v30 = vmul.f32 %v185_v25, %v174_v11 }
  0x6b   :  { %v180_v35 = vadd.f32 1.0, %v179_v29  ;;  %v187_v37 = vadd.f32 1.0, %v186_v30 }
  0x6d   :  { %v188_v38 = vmul.f32 %v187_v37, %v172_v5  ;;  %v197_v41 = vxor.u32 2147483648, %v180_v35 }
  0x6f   :  { %v194_v47 = vxor.u32 2147483648, %v188_v38  ;;  %v198_v18 = vsel %vm196_vm2, %v197_v41, %v188_v38 }
  0x71   :  { %v195_v50 = vsel %vm193_vm12, %v180_v35, %v194_v47 }
  0x72   :  { %v199_v36 = vsel %vm192_vm3, %v195_v50, %v198_v18 }
  0x73   :  { %v200_v54 = vsel %vm189_vm1, nan, %v199_v36 }
  0x74   :  { %v211_v56 = vmul.f32 %v209_v51, %v200_v54 }
  0x76   :  { %v212_v59 = vadd.f32 %v211_v56, %v210_v55 }
  0x78   :  { %v238_v4 = vmul.f32 %v235_v58, %v212_v59 }
  0x7a   :  { %v239_v8 = vadd.f32 %v238_v4, %v237_v60 }
  0x7c   :  { %241 = vst.msk [vmem:[#allocation5] sm:$0x1] %vm240_vm5, %v239_v8 }
  0x7d   :  { %252 = dma.vmem_to_hbm [thread:$0]  %s248_s24, 16, %s250_s27, [#allocation3]  }
  0x7e   :  { %318 = dma.done.wait [#allocation3], 16  }
  0x7f   :  { %319 = vsyncadd [#allocation3], 4294967280 }
  0x80   :  { %257 = vsyncpa [#allocation3], 1 }
  0x81   :  { %258 = vsyncpa [#allocation4], 1 }

</bundles_post_ra>
